<compile_context>
chip_gen: v7x
topology: tpu7x:2x2x1
jax: 0.10.0
libtpu: 0.0.40
codegen_flags: <defaults>
</compile_context>

<pallas_src>
import jax
import jax.numpy as jnp
from jax.experimental import pallas as pl
from jax.experimental.pallas import tpu as pltpu


def _round_up(x, m):
    return (x + m - 1) // m * m


def mlp_kernel(x_ref, w_in_ref, b_in_ref, w_fc_ref, b_fc_ref,
               w_out_ref, b_out_ref, o_ref):
    # Fused MLP on one batch tile: every matmul / bias / relu is 128-lane dense
    # thanks to wrapper-side padding; output store is lane-dense as well.
    x = x_ref[...]  # already f32 — no redundant cast

    h = jnp.dot(x, w_in_ref[...], preferred_element_type=jnp.float32)
    h = jnp.maximum(h + b_in_ref[...], 0.0)

    h = jnp.dot(h, w_fc_ref[...], preferred_element_type=jnp.float32)
    h = jnp.maximum(h + b_fc_ref[...], 0.0)

    out = jnp.dot(h, w_out_ref[...], preferred_element_type=jnp.float32)
    o_ref[...] = (out + b_out_ref[...]).astype(o_ref.dtype)


def position_predictor_3d(x, params, *, tile_m=None):
    """x: [B, n_feature] float32. params: dict of (already-transposed) weights."""
    B, n_feature = x.shape
    n_hidden = params["w_in"].shape[1]
    n_output = params["w_out"].shape[1]

    # Lane-align hidden and output dims.
    H = _round_up(n_hidden, 128)
    N = _round_up(n_output, 128)

    # Batch tile: large enough to amortize ~0.35us/grid-step overhead and give
    # the MXU a real M, small enough to stay trivially inside VMEM.
    if tile_m is None:
        tile_m = 512
    tile_m = max(8, _round_up(min(tile_m, _round_up(B, 8)), 8))
    B_pad = _round_up(B, tile_m)

    # Zero-pad activations / weights. Padded hidden lanes remain exactly zero
    # through relu(0*w + 0), so un-padded outputs are numerically unchanged.
    xp = jnp.pad(x, ((0, B_pad - B), (0, 0)))
    w_in = jnp.pad(params["w_in"], ((0, 0), (0, H - n_hidden)))
    b_in = jnp.pad(params["b_in"], ((0, 0), (0, H - n_hidden)))
    w_fc = jnp.pad(params["w_fc"], ((0, H - n_hidden), (0, H - n_hidden)))
    b_fc = jnp.pad(params["b_fc"], ((0, 0), (0, H - n_hidden)))
    w_out = jnp.pad(params["w_out"], ((0, H - n_hidden), (0, N - n_output)))
    b_out = jnp.pad(params["b_out"], ((0, 0), (0, N - n_output)))

    grid = (B_pad // tile_m,)
    wspec = lambda shape: pl.BlockSpec(shape, lambda i: (0, 0))  # grid-invariant

    flops = 2 * B * (n_feature * n_hidden + n_hidden * n_hidden
                     + n_hidden * n_output)
    bytes_accessed = 4 * (xp.size + w_in.size + b_in.size + w_fc.size
                          + b_fc.size + w_out.size + b_out.size + B_pad * N)

    out = pl.pallas_call(
        mlp_kernel,
        out_shape=jax.ShapeDtypeStruct((B_pad, N), jnp.float32),
        grid_spec=pltpu.PrefetchScalarGridSpec(
            num_scalar_prefetch=0,
            grid=grid,
            in_specs=[
                pl.BlockSpec((tile_m, n_feature), lambda i: (i, 0)),  # x tile
                wspec((n_feature, H)),                                # w_in
                wspec((1, H)),                                        # b_in
                wspec((H, H)),                                        # w_fc
                wspec((1, H)),                                        # b_fc
                wspec((H, N)),                                        # w_out
                wspec((1, N)),                                        # b_out
            ],
            out_specs=pl.BlockSpec((tile_m, N), lambda i: (i, 0)),
        ),
        compiler_params=pltpu.CompilerParams(
            dimension_semantics=("parallel",),
            vmem_limit_bytes=32 * 1024 * 1024,
        ),
        cost_estimate=pl.CostEstimate(
            flops=flops, transcendentals=0, bytes_accessed=bytes_accessed),
    )(xp, w_in, b_in, w_fc, b_fc, w_out, b_out)

    # Slice away batch / lane padding.
    return out[:B, :n_output]


def init_params(key, n_feature, n_hidden, n_output):
    """Deterministic synthetic init (shapes match nn.Linear, stored transposed)."""
    ks = jax.random.split(key, 6)

    def lin(kw, kb, fan_in, fan_out):
        bound = 1.0 / jnp.sqrt(fan_in)
        w = jax.random.uniform(kw, (fan_in, fan_out), jnp.float32, -bound, bound)
        b = jax.random.uniform(kb, (1, fan_out), jnp.float32, -bound, bound)
        return w, b

    w_in, b_in = lin(ks[0], ks[1], n_feature, n_hidden)
    w_fc, b_fc = lin(ks[2], ks[3], n_hidden, n_hidden)
    w_out, b_out = lin(ks[4], ks[5], n_hidden, n_output)
    return dict(w_in=w_in, b_in=b_in, w_fc=w_fc, b_fc=b_fc,
                w_out=w_out, b_out=b_out)


def reference_forward(x, p):
    h = jax.nn.relu(x @ p["w_in"] + p["b_in"])
    h = jax.nn.relu(h @ p["w_fc"] + p["b_fc"])
    return h @ p["w_out"] + p["b_out"]


if __name__ == "__main__":
    key = jax.random.PRNGKey(0)
    k_x, k_p = jax.random.split(key)

    B, n_feature, n_hidden, n_output = 16, 6, 64, 1  # n_layer = 1
    x = jax.random.normal(k_x, (B, n_feature), jnp.float32)
    params = init_params(k_p, n_feature, n_hidden, n_output)

    out = jax.block_until_ready(position_predictor_3d(x, params))

    ref = reference_forward(x, params)
    assert out.shape == (B, n_output)
    assert jnp.allclose(out, ref, atol=1e-5, rtol=1e-5)

    print("KERNEL_OK")
</pallas_src>

<mosaic_0001>
module attributes {stable_mosaic.version = 11 : i64} {
  func.func @mlp_kernel(%arg0: i32, %arg1: memref<16x6xf32, #tpu.memory_space<vmem>>, %arg2: memref<6x128xf32, #tpu.memory_space<vmem>>, %arg3: memref<1x128xf32, #tpu.memory_space<vmem>>, %arg4: memref<128x128xf32, #tpu.memory_space<vmem>>, %arg5: memref<1x128xf32, #tpu.memory_space<vmem>>, %arg6: memref<128x128xf32, #tpu.memory_space<vmem>>, %arg7: memref<1x128xf32, #tpu.memory_space<vmem>>, %arg8: memref<16x128xf32, #tpu.memory_space<vmem>>) attributes {dimension_semantics = [#tpu.dimension_semantics<parallel>], iteration_bounds = array<i64: 1>, scalar_prefetch = 0 : i64, scratch_operands = 0 : i64, tpu.core_type = #tpu.core_type<tc>, window_params = [{transform_indices = @transform_0, window_bounds = array<i64: 16, 6>}, {pipeline_mode = #tpu.pipeline_mode<synchronous>, transform_indices = @transform_1, window_bounds = array<i64: 6, 128>}, {pipeline_mode = #tpu.pipeline_mode<synchronous>, transform_indices = @transform_2, window_bounds = array<i64: 1, 128>}, {pipeline_mode = #tpu.pipeline_mode<synchronous>, transform_indices = @transform_3, window_bounds = array<i64: 128, 128>}, {pipeline_mode = #tpu.pipeline_mode<synchronous>, transform_indices = @transform_4, window_bounds = array<i64: 1, 128>}, {pipeline_mode = #tpu.pipeline_mode<synchronous>, transform_indices = @transform_5, window_bounds = array<i64: 128, 128>}, {pipeline_mode = #tpu.pipeline_mode<synchronous>, transform_indices = @transform_6, window_bounds = array<i64: 1, 128>}, {transform_indices = @transform_7, window_bounds = array<i64: 16, 128>}]} {
    %c0 = arith.constant 0 : index
    %c0_0 = arith.constant 0 : index
    %0 = vector.load %arg1[%c0, %c0_0] : memref<16x6xf32, #tpu.memory_space<vmem>>, vector<16x6xf32>
    %c0_1 = arith.constant 0 : index
    %c0_2 = arith.constant 0 : index
    %1 = vector.load %arg2[%c0_1, %c0_2] : memref<6x128xf32, #tpu.memory_space<vmem>>, vector<6x128xf32>
    %cst = arith.constant dense<0.000000e+00> : vector<16x128xf32>
    %2 = tpu.matmul %0, %1, %cst {dimension_numbers = #tpu.dot_dimension_numbers<[1], [0], [0], [1], [0, 0, 1, 1], [], []>} : vector<16x6xf32>, vector<6x128xf32>, vector<16x128xf32> -> vector<16x128xf32>
    %c0_3 = arith.constant 0 : index
    %c0_4 = arith.constant 0 : index
    %3 = vector.load %arg3[%c0_3, %c0_4] : memref<1x128xf32, #tpu.memory_space<vmem>>, vector<1x128xf32>
    %4 = vector.broadcast %3 : vector<1x128xf32> to vector<16x128xf32>
    %5 = arith.addf %2, %4 : vector<16x128xf32>
    %cst_5 = arith.constant 0.000000e+00 : f32
    %6 = vector.broadcast %cst_5 : f32 to vector<16x128xf32>
    %7 = arith.maximumf %5, %6 : vector<16x128xf32>
    %c0_6 = arith.constant 0 : index
    %c0_7 = arith.constant 0 : index
    %8 = vector.load %arg4[%c0_6, %c0_7] : memref<128x128xf32, #tpu.memory_space<vmem>>, vector<128x128xf32>
    %cst_8 = arith.constant dense<0.000000e+00> : vector<16x128xf32>
    %9 = tpu.matmul %7, %8, %cst_8 {dimension_numbers = #tpu.dot_dimension_numbers<[1], [0], [0], [1], [0, 0, 1, 1], [], []>} : vector<16x128xf32>, vector<128x128xf32>, vector<16x128xf32> -> vector<16x128xf32>
    %c0_9 = arith.constant 0 : index
    %c0_10 = arith.constant 0 : index
    %10 = vector.load %arg5[%c0_9, %c0_10] : memref<1x128xf32, #tpu.memory_space<vmem>>, vector<1x128xf32>
    %11 = vector.broadcast %10 : vector<1x128xf32> to vector<16x128xf32>
    %12 = arith.addf %9, %11 : vector<16x128xf32>
    %cst_11 = arith.constant 0.000000e+00 : f32
    %13 = vector.broadcast %cst_11 : f32 to vector<16x128xf32>
    %14 = arith.maximumf %12, %13 : vector<16x128xf32>
    %c0_12 = arith.constant 0 : index
    %c0_13 = arith.constant 0 : index
    %15 = vector.load %arg6[%c0_12, %c0_13] : memref<128x128xf32, #tpu.memory_space<vmem>>, vector<128x128xf32>
    %cst_14 = arith.constant dense<0.000000e+00> : vector<16x128xf32>
    %16 = tpu.matmul %14, %15, %cst_14 {dimension_numbers = #tpu.dot_dimension_numbers<[1], [0], [0], [1], [0, 0, 1, 1], [], []>} : vector<16x128xf32>, vector<128x128xf32>, vector<16x128xf32> -> vector<16x128xf32>
    %c0_15 = arith.constant 0 : index
    %c0_16 = arith.constant 0 : index
    %17 = vector.load %arg7[%c0_15, %c0_16] : memref<1x128xf32, #tpu.memory_space<vmem>>, vector<1x128xf32>
    %18 = vector.broadcast %17 : vector<1x128xf32> to vector<16x128xf32>
    %19 = arith.addf %16, %18 : vector<16x128xf32>
    %c0_17 = arith.constant 0 : index
    %c0_18 = arith.constant 0 : index
    %20 = vector.load %arg8[%c0_17, %c0_18] : memref<16x128xf32, #tpu.memory_space<vmem>>, vector<16x128xf32>
    tpu.vector_store %arg8[%c0_17, %c0_18], %19 {strides = array<i32>} : memref<16x128xf32, #tpu.memory_space<vmem>>, vector<16x128xf32>,
    return
  }
  func.func @transform_0(%arg0: i32) -> (i32, i32) {
    %c0_i32 = arith.constant 0 : i32
    %c0_i32_0 = arith.constant 0 : i32
    return %arg0, %c0_i32 : i32, i32
  }
  func.func @transform_1(%arg0: i32) -> (i32, i32) {
    %c0_i32 = arith.constant 0 : i32
    %c0_i32_0 = arith.constant 0 : i32
    %c0_i32_1 = arith.constant 0 : i32
    return %c0_i32, %c0_i32_0 : i32, i32
  }
  func.func @transform_2(%arg0: i32) -> (i32, i32) {
    %c0_i32 = arith.constant 0 : i32
    %c0_i32_0 = arith.constant 0 : i32
    %c0_i32_1 = arith.constant 0 : i32
    return %c0_i32, %c0_i32_0 : i32, i32
  }
  func.func @transform_3(%arg0: i32) -> (i32, i32) {
    %c0_i32 = arith.constant 0 : i32
    %c0_i32_0 = arith.constant 0 : i32
    %c0_i32_1 = arith.constant 0 : i32
    return %c0_i32, %c0_i32_0 : i32, i32
  }
  func.func @transform_4(%arg0: i32) -> (i32, i32) {
    %c0_i32 = arith.constant 0 : i32
    %c0_i32_0 = arith.constant 0 : i32
    %c0_i32_1 = arith.constant 0 : i32
    return %c0_i32, %c0_i32_0 : i32, i32
  }
  func.func @transform_5(%arg0: i32) -> (i32, i32) {
    %c0_i32 = arith.constant 0 : i32
    %c0_i32_0 = arith.constant 0 : i32
    %c0_i32_1 = arith.constant 0 : i32
    return %c0_i32, %c0_i32_0 : i32, i32
  }
  func.func @transform_6(%arg0: i32) -> (i32, i32) {
    %c0_i32 = arith.constant 0 : i32
    %c0_i32_0 = arith.constant 0 : i32
    %c0_i32_1 = arith.constant 0 : i32
    return %c0_i32, %c0_i32_0 : i32, i32
  }
  func.func @transform_7(%arg0: i32) -> (i32, i32) {
    %c0_i32 = arith.constant 0 : i32
    %c0_i32_0 = arith.constant 0 : i32
    return %arg0, %c0_i32 : i32, i32
  }
}

</mosaic_0001>

<bundles_post_ra>
// kernel: tpu_custom_call.1
= control target key start
LH: loop header
LB: loop body
LE: loop exit
PB: predicated region body
PF: predicated region fallthrough
CT: control target
= control target key end

     0   :  { %12 = vsyncpa [#allocation3], 0  ;;  %s740_s0 = inlined_call_operand.vmem [shape: f32[16,6], index: 0, kind: input, shape index: {}]   ;;  %s741_s1 = inlined_call_operand.vmem [shape: f32[6,128], index: 1, kind: input, shape index: {}]   ;;  %s742_s2 = inlined_call_operand.vmem [shape: f32[1,128], index: 2, kind: input, shape index: {}]   ;;  %s743_s3 = inlined_call_operand.hbm [shape: f32[128,128], index: 3, kind: input, shape index: {}]   ;;  %s744_s4 = inlined_call_operand.vmem [shape: f32[1,128], index: 4, kind: input, shape index: {}]   ;;  %s745_s5 = inlined_call_operand.hbm [shape: f32[128,128], index: 5, kind: input, shape index: {}]   ;;  %s746_s6 = inlined_call_operand.vmem [shape: f32[1,128], index: 6, kind: input, shape index: {}]   ;;  %s747_s7 = inlined_call_operand.hbm [shape: f32[16,128], index: 7, kind: output, shape index: {}]  }
   0x1   :  { %13 = vsyncpa [#allocation6], 0 }
   0x2   :  { %14 = vsyncpa [#allocation4], 0  ;;  %s632_s24 = smov [#allocation2]   ;;  %s560_s28 = scalar_lea.hbm %s743_s3, 2048 }
   0x3   :  { %s26_s25 = sshll.u32 %s632_s24, 4  ;;  %p561_p0 = scmp.ne.s32.totalorder %s743_s3, %s560_s28  ;;  %s27_s25 = int_to_ptr.vmem [resolvable:$true] %s26_s25 }
   0x4   :  { %p564_p1 = scmp.lt.u32.totalorder %s560_s28, %s743_s3 }
   0x6   :  { %p566_p2 = pnand %p564_p1, %p561_p0 }
   0x8   :  { %569 = shalt.err (!%p566_p2)
}
   0x9   :  { %s570_s10 = scalar_lea.vmem %s27_s25, 2048  ;;  %p575_p4 = scmp.lt.s32.totalorder %s27_s25, %s27_s25 }
   0xa   :  { %p571_p3 = scmp.ne.s32.totalorder %s27_s25, %s570_s10  ;;  %p576_p5 = scmp.lt.s32.totalorder %s570_s10, %s570_s10 }
   0xc   :  { %p577_p6 = por %p576_p5, %p575_p4 }
   0xe   :  { %p578_p7 = pnand %p577_p6, %p571_p3 }
  0x10   :  { %581 = shalt.err (!%p578_p7)
}
  0x11   :  { %s633_s11 = smov 128   ;;  %s634_s12 = smov 8  }
  0x12   :  { %32 = dma.hbm_to_vmem [thread:$0]  %s743_s3, 2048, %s27_s25, [#allocation3], %s633_s11, %s633_s11, %s634_s12  }
  0x13   :  { %s635_s15 = smov [#allocation5]   ;;  %s582_s19 = scalar_lea.hbm %s745_s5, 2048 }
  0x14   :  { %s40_s16 = sshll.u32 %s635_s15, 4  ;;  %p583_p8 = scmp.ne.s32.totalorder %s745_s5, %s582_s19  ;;  %s41_s16 = int_to_ptr.vmem [resolvable:$true] %s40_s16 }
  0x15   :  { %p586_p9 = scmp.lt.u32.totalorder %s582_s19, %s745_s5 }
  0x17   :  { %p588_p10 = pnand %p586_p9, %p583_p8 }
  0x19   :  { %591 = shalt.err (!%p588_p10)
}
  0x1a   :  { %s592_s24 = scalar_lea.vmem %s41_s16, 2048  ;;  %p597_p12 = scmp.lt.s32.totalorder %s41_s16, %s41_s16 }
  0x1b   :  { %p593_p11 = scmp.ne.s32.totalorder %s41_s16, %s592_s24  ;;  %p598_p13 = scmp.lt.s32.totalorder %s592_s24, %s592_s24 }
  0x1d   :  { %p599_p0 = por %p598_p13, %p597_p12 }
  0x1f   :  { %p600_p1 = pnand %p599_p0, %p593_p11 }
  0x21   :  { %603 = shalt.err (!%p600_p1)
}
  0x22   :  { %46 = dma.hbm_to_vmem [thread:$0]  %s745_s5, 2048, %s41_s16, [#allocation6], %s633_s11, %s633_s11, %s634_s12  }
  0x23   :  { %626 = dma.done.wait [#allocation3], 2048  }
  0x24   :  { %627 = vsyncadd [#allocation3], 4294965248 }
  0x25   :  { %628 = dma.done.wait [#allocation6], 2048  }
  0x26   :  { %629 = vsyncadd [#allocation6], 4294965248  ;;  %vm72_vm0 = vcmask 1045504   ;;  %vm65_vm1 = vcmask 48128   ;;  %v57_v0 = vld [vmem:[%s741_s1] sm:$0x3f] }
  0x27   :  { %v55_v1 = vld [vmem:[%s740_s0] sm:$0xff]  ;;  %v56_v2 = vld [vmem:[%s740_s0 + $0x8] sm:$0xff]  ;;  %416 = vmatprep.subr.msk.mxu0 %vm72_vm0, %v57_v0  ;;  %v155_v5 = vld [vmem:[#allocation2 + $0x10] sm:$0xff]  ;;  %s636_s13 = smov [#allocation7]  }
  0x28   :  { %418 = vmatprep.mubr.msk.f32.mxu0 %vm65_vm1, %v55_v1  ;;  %v153_v3 = vld [vmem:[#allocation2] sm:$0xff]  ;;  %v154_v4 = vld [vmem:[#allocation2 + $0x8] sm:$0xff]  ;;  %417 = vmatpush3.msk.msra.mxu0 %vm72_vm0, %v57_v0  ;;  %v156_v7 = vld [vmem:[#allocation2 + $0x18] sm:$0xff]  ;;  %s358_s14 = sshll.u32 %s636_s13, 4  ;;  %s359_s14 = int_to_ptr.vmem [resolvable:$true] %s358_s14 }
  0x29   :  { %v491_v6 = vpack.c.bf16 %v154_v4, %v153_v3  ;;  %419 = vmatmul.mubr.msk.f32.vlgmr.msra.gmra.mrb[0].mxu0 %vm65_vm1, %v56_v2  ;;  %v495_v8 = vpack.c.bf16 %v156_v7, %v155_v5  ;;  %v157_v9 = vld [vmem:[#allocation2 + $0x20] sm:$0xff]  ;;  %v158_v10 = vld [vmem:[#allocation2 + $0x28] sm:$0xff]  ;;  %v159_v12 = vld [vmem:[#allocation2 + $0x30] sm:$0xff]  ;;  %p609_p3 = scmp.lt.s32.totalorder %s359_s14, %s359_s14 }
  0x2a   :  { %v499_v11 = vpack.c.bf16 %v158_v10, %v157_v9  ;;  %v160_v13 = vld [vmem:[#allocation2 + $0x38] sm:$0xff]  ;;  %v161_v15 = vld [vmem:[#allocation2 + $0x40] sm:$0xff]  ;;  %v162_v16 = vld [vmem:[#allocation2 + $0x48] sm:$0xff] }
  0x2b   :  { %492 = vmatprep.subr.bf16.mxu1 %v491_v6  ;;  %v503_v14 = vpack.c.bf16 %v160_v13, %v159_v12  ;;  %v507_v17 = vpack.c.bf16 %v162_v16, %v161_v15  ;;  %v163_v18 = vld [vmem:[#allocation2 + $0x50] sm:$0xff]  ;;  %v164_v19 = vld [vmem:[#allocation2 + $0x58] sm:$0xff]  ;;  %v165_v21 = vld [vmem:[#allocation2 + $0x60] sm:$0xff] }
  0x2c   :  { %494 = vmatpush3.bf16.msra.mxu1 %v491_v6  ;;  %v511_v20 = vpack.c.bf16 %v164_v19, %v163_v18  ;;  %v166_v22 = vld [vmem:[#allocation2 + $0x68] sm:$0xff]  ;;  %v167_v24 = vld [vmem:[#allocation2 + $0x70] sm:$0xff]  ;;  %v168_v25 = vld [vmem:[#allocation2 + $0x78] sm:$0xff] }
  0x2d   :  { %496 = vmatprep.subr.bf16.mxu1 %v495_v8  ;;  %v515_v23 = vpack.c.bf16 %v166_v22, %v165_v21  ;;  %v519_v26 = vpack.c.bf16 %v168_v25, %v167_v24  ;;  %v253_v27 = vld [vmem:[#allocation5] sm:$0xff]  ;;  %v254_v28 = vld [vmem:[#allocation5 + $0x8] sm:$0xff]  ;;  %v255_v29 = vld [vmem:[#allocation5 + $0x10] sm:$0xff] }
  0x2e   :  { %v523_v30 = vpack.c.bf16 %v254_v28, %v253_v27  ;;  %v256_v31 = vld [vmem:[#allocation5 + $0x18] sm:$0xff]  ;;  %v257_v33 = vld [vmem:[#allocation5 + $0x20] sm:$0xff]  ;;  %v258_v34 = vld [vmem:[#allocation5 + $0x28] sm:$0xff] }
  0x2f   :  { %v527_v32 = vpack.c.bf16 %v256_v31, %v255_v29  ;;  %v531_v35 = vpack.c.bf16 %v258_v34, %v257_v33  ;;  %v259_v36 = vld [vmem:[#allocation5 + $0x30] sm:$0xff]  ;;  %v260_v37 = vld [vmem:[#allocation5 + $0x38] sm:$0xff]  ;;  %v261_v39 = vld [vmem:[#allocation5 + $0x40] sm:$0xff] }
  0x30   :  { %498 = vmatpush3.bf16.msra.mxu1 %v495_v8  ;;  %524 = vmatprep.subr.bf16.mxu0 %v523_v30  ;;  %v535_v38 = vpack.c.bf16 %v260_v37, %v259_v36  ;;  %v262_v40 = vld [vmem:[#allocation5 + $0x48] sm:$0xff]  ;;  %v263_v42 = vld [vmem:[#allocation5 + $0x50] sm:$0xff]  ;;  %v264_v43 = vld [vmem:[#allocation5 + $0x58] sm:$0xff] }
  0x31   :  { %500 = vmatprep.subr.bf16.mxu1 %v499_v11  ;;  %526 = vmatpush3.bf16.msra.mxu0 %v523_v30  ;;  %v539_v41 = vpack.c.bf16 %v262_v40, %v261_v39  ;;  %v543_v44 = vpack.c.bf16 %v264_v43, %v263_v42  ;;  %v265_v45 = vld [vmem:[#allocation5 + $0x60] sm:$0xff]  ;;  %v266_v46 = vld [vmem:[#allocation5 + $0x68] sm:$0xff]  ;;  %v267_v55 = vld [vmem:[#allocation5 + $0x70] sm:$0xff] }
  0x32   :  { %528 = vmatprep.subr.bf16.mxu0 %v527_v32  ;;  %v547_v47 = vpack.c.bf16 %v266_v46, %v265_v45  ;;  %v371_v48 = vld [vmem:[%s742_s2] ss:$0 sm:$0xff]  ;;  %v268_v56 = vld [vmem:[#allocation5 + $0x78] sm:$0xff] }
  0x33   :  { %v551_v57 = vpack.c.bf16 %v268_v56, %v267_v55  ;;  %v375_v58 = vld [vmem:[%s744_s4] ss:$0 sm:$0xff]  ;;  %s604_s4 = scalar_lea.vmem %s359_s14, 256 }
  0x34   :  { %502 = vmatpush3.bf16.msra.mxu1 %v499_v11  ;;  %v376_v1 = vld [vmem:[%s746_s6] ss:$0 sm:$0xff]  ;;  %p605_p2 = scmp.ne.s32.totalorder %s359_s14, %s604_s4  ;;  %p610_p4 = scmp.lt.s32.totalorder %s604_s4, %s604_s4 }
  0x35   :  { %504 = vmatprep.subr.bf16.mxu1 %v503_v14  ;;  %530 = vmatpush3.bf16.msra.mxu0 %v527_v32 }
  0x36   :  { %532 = vmatprep.subr.bf16.mxu0 %v531_v35  ;;  %p611_p5 = por %p610_p4, %p609_p3 }
  0x38   :  { %506 = vmatpush3.bf16.msra.mxu1 %v503_v14  ;;  %p612_p6 = pnand %p611_p5, %p605_p2 }
  0x39   :  { %508 = vmatprep.subr.bf16.mxu1 %v507_v17  ;;  %534 = vmatpush3.bf16.msra.mxu0 %v531_v35 }
  0x3a   :  { %536 = vmatprep.subr.bf16.mxu0 %v535_v38 }
  0x3c   :  { %510 = vmatpush3.bf16.msra.mxu1 %v507_v17 }
  0x3d   :  { %512 = vmatprep.subr.bf16.mxu1 %v511_v20  ;;  %538 = vmatpush3.bf16.msra.mxu0 %v535_v38 }
  0x3e   :  { %540 = vmatprep.subr.bf16.mxu0 %v539_v41 }
  0x40   :  { %514 = vmatpush3.bf16.msra.mxu1 %v511_v20 }
  0x41   :  { %516 = vmatprep.subr.bf16.mxu1 %v515_v23  ;;  %542 = vmatpush3.bf16.msra.mxu0 %v539_v41 }
  0x42   :  { %544 = vmatprep.subr.bf16.mxu0 %v543_v44 }
  0x44   :  { %518 = vmatpush3.bf16.msra.mxu1 %v515_v23 }
  0x45   :  { %520 = vmatprep.subr.bf16.mxu1 %v519_v26  ;;  %546 = vmatpush3.bf16.msra.mxu0 %v543_v44 }
  0x46   :  { %548 = vmatprep.subr.bf16.mxu0 %v547_v47 }
  0x48   :  { %522 = vmatpush3.bf16.msra.mxu1 %v519_v26 }
  0x49   :  { %550 = vmatpush3.bf16.msra.mxu0 %v547_v47 }
  0x4a   :  { %552 = vmatprep.subr.bf16.mxu0 %v551_v57 }
  0x4d   :  { %554 = vmatpush3.bf16.msra.mxu0 %v551_v57 }
  0xfc   :  { %v420_v49 = vpop.f32.mrb[0].mxu0 }
  0xfd   :  { %v148_v50 = vadd.f32 %v420_v49, %v371_v48  ;;  %v142_v51 = vpop.f32.mrb[1].mxu0 }
  0xfe   :  { %v143_v52 = vadd.f32 %v371_v48, %v142_v51 }
  0xff   :  { %v152_v54 = vmax.f32 %v148_v50, 0.0 }
 0x100   :  { %v151_v53 = vmax.f32 %v143_v52, 0.0 }
 0x102   :  { %453 = vmatprep.mubr.f32.mxu1 %v151_v53 }
 0x103   :  { %454 = vmatmul.mubr.f32.vlgmr.msra.gmra.mrb[0].mxu1 %v152_v54 }
 0x1d6   :  { %v455_v59 = vpop.f32.mrb[0].mxu1 }
 0x1d7   :  { %v248_v60 = vadd.f32 %v455_v59, %v375_v58  ;;  %v242_v61 = vpop.f32.mrb[1].mxu1 }
 0x1d8   :  { %v243_v62 = vadd.f32 %v375_v58, %v242_v61 }
 0x1d9   :  { %v252_v0 = vmax.f32 %v248_v60, 0.0 }
 0x1da   :  { %v251_v63 = vmax.f32 %v243_v62, 0.0 }
 0x1dc   :  { %488 = vmatprep.mubr.f32.mxu0 %v251_v63 }
 0x1dd   :  { %489 = vmatmul.mubr.f32.vlgmr.msra.gmra.mrb[2].mxu0 %v252_v0 }
 0x2b0   :  { %v490_v2 = vpop.f32.mrb[2].mxu0 }
 0x2b1   :  { %v348_v3 = vadd.f32 %v490_v2, %v376_v1  ;;  %v342_v4 = vpop.f32.mrb[3].mxu0 }
 0x2b2   :  { %v343_v5 = vadd.f32 %v376_v1, %v342_v4 }
 0x2b3   :  { %352 = vst [vmem:[#allocation7 + $0x8] sm:$0xff] %v348_v3 }
 0x2b4   :  { %351 = vst [vmem:[#allocation7] sm:$0xff] %v343_v5 }
 0x2b5   :  { %615 = shalt.err (!%p612_p6)
}
 0x2b6   :  { %s616_s6 = scalar_lea.hbm %s747_s7, 256 }
 0x2b7   :  { %p617_p7 = scmp.ne.s32.totalorder %s747_s7, %s616_s6  ;;  %p620_p8 = scmp.lt.u32.totalorder %s616_s6, %s747_s7 }
 0x2b9   :  { %p622_p9 = pnand %p620_p8, %p617_p7 }
 0x2bb   :  { %625 = shalt.err (!%p622_p9)
}
 0x2bc   :  { %364 = dma.vmem_to_hbm [thread:$0]  %s359_s14, 256, %s747_s7, [#allocation4], %s633_s11, %s633_s11, %s634_s12  }
 0x2bd   :  { %630 = dma.done.wait [#allocation4], 256  }
 0x2be   :  { %631 = vsyncadd [#allocation4], 4294967040 }
 0x2bf   :  { %368 = vsyncpa [#allocation3], 1 }
 0x2c0   :  { %369 = vsyncpa [#allocation6], 1 }
 0x2c1   :  { %370 = vsyncpa [#allocation4], 1 }

</bundles_post_ra>
